<compile_context>
chip_gen: v7x
topology: tpu7x:2x2x1
jax: 0.10.0
libtpu: 0.0.40
codegen_flags: <defaults>
</compile_context>

<pallas_src>
import jax
import jax.numpy as jnp
from jax.experimental import pallas as pl
from jax.experimental.pallas import tpu as pltpu

IN_DIM = 784
HID = 128
OUT = 10
OUT_PAD = 16  # small lane pad: full-array last dim, 8x less writeback than 128


def mlp_kernel(x_ref, w1_ref, b1_ref, w2_ref, b2_ref, o_ref):
    # x_ref : [TB, 784]  f32   (cast to bf16 in-VMEM for the MXU)
    # w1_ref: [784, 128] bf16  b1_ref: [1, 128] f32
    # w2_ref: [128, 16]  bf16  b2_ref: [1, 16]  f32
    # o_ref : [TB, 16]   f32
    x_bf16 = x_ref[...].astype(jnp.bfloat16)
    h = jnp.dot(x_bf16, w1_ref[...], preferred_element_type=jnp.float32)
    h = jnp.maximum(h + b1_ref[...], 0.0)              # bias + ReLU in f32 (VPU)
    z = jnp.dot(h.astype(jnp.bfloat16), w2_ref[...],
                preferred_element_type=jnp.float32)
    o_ref[...] = jax.nn.sigmoid(z + b2_ref[...])       # f32 sigmoid (EUP)


def _round_up(x, m):
    return (x + m - 1) // m * m


def net_forward(x_nchw, w1, b1, w2, b2, *, tb=2048):
    """Pallas equivalent of Net.forward.

    x_nchw: [B, 1, 28, 28] float32 (NCHW, matching the PyTorch module)
    w1: [784, 128], b1: [128], w2: [128, 10], b2: [10]   (all float32)
    returns: [B, 10] float32 (sigmoid activations)
    """
    B = x_nchw.shape[0]
    x = x_nchw.reshape(B, -1).astype(jnp.float32)    # torch.flatten(x, 1)

    # Batch tile: multiple of 8 sublanes; capped at ~half the batch so there
    # are >= 2 tiles whenever possible (both v7x TensorCores get work).
    TB = max(8, min(_round_up(tb, 8), _round_up((B + 1) // 2, 8)))
    num_tiles = pl.cdiv(B, TB)   # overhang rows in the last tile are clipped

    # Weights: w1/w2 in bf16 for the MXU; biases stay f32.
    w1_bf16 = w1.astype(jnp.bfloat16)
    b1_2d = b1.reshape(1, HID).astype(jnp.float32)
    w2_pad = jnp.zeros((HID, OUT_PAD), jnp.bfloat16).at[:, :OUT].set(
        w2.astype(jnp.bfloat16))
    b2_pad = jnp.zeros((1, OUT_PAD), jnp.float32).at[0, :OUT].set(b2)

    cost = pl.CostEstimate(
        flops=2 * B * IN_DIM * HID + 2 * B * HID * OUT_PAD,
        transcendentals=B * OUT_PAD,
        bytes_accessed=(B * IN_DIM * 4                # f32 x (single read)
                        + IN_DIM * HID * 2            # bf16 w1
                        + HID * OUT_PAD * 2           # bf16 w2
                        + (HID + OUT_PAD) * 4         # biases
                        + B * OUT_PAD * 4),           # f32 out
    )

    out_pad = pl.pallas_call(
        mlp_kernel,
        out_shape=jax.ShapeDtypeStruct((B, OUT_PAD), jnp.float32),
        grid=(num_tiles,),
        in_specs=[
            pl.BlockSpec((TB, IN_DIM), lambda i: (i, 0)),       # x tile
            pl.BlockSpec((IN_DIM, HID), lambda i: (0, 0)),      # w1 (resident)
            pl.BlockSpec((1, HID), lambda i: (0, 0)),           # b1 (resident)
            pl.BlockSpec((HID, OUT_PAD), lambda i: (0, 0)),     # w2 (resident)
            pl.BlockSpec((1, OUT_PAD), lambda i: (0, 0)),       # b2 (resident)
        ],
        out_specs=pl.BlockSpec((TB, OUT_PAD), lambda i: (i, 0)),
        compiler_params=pltpu.CompilerParams(
            dimension_semantics=("parallel",),
        ),
        cost_estimate=cost,
    )(x, w1_bf16, b1_2d, w2_pad, b2_pad)

    # Padded columns hold sigmoid(0)=0.5; never expose out_pad directly.
    return out_pad[:B, :OUT]


def init_params(key):
    """Deterministic init matching nn.Linear shapes (Kaiming-uniform-like)."""
    k1, k2, k3, k4 = jax.random.split(key, 4)
    lim1 = 1.0 / jnp.sqrt(784.0)
    lim2 = 1.0 / jnp.sqrt(128.0)
    # PyTorch stores weight as [out, in] and computes x @ W.T; we store [in, out].
    w1 = jax.random.uniform(k1, (IN_DIM, HID), jnp.float32, -lim1, lim1)
    b1 = jax.random.uniform(k2, (HID,), jnp.float32, -lim1, lim1)
    w2 = jax.random.uniform(k3, (HID, OUT), jnp.float32, -lim2, lim2)
    b2 = jax.random.uniform(k4, (OUT,), jnp.float32, -lim2, lim2)
    return w1, b1, w2, b2


if __name__ == "__main__":
    key = jax.random.PRNGKey(0)
    kx, kp = jax.random.split(key)
    B = 8
    x = jax.random.normal(kx, (B, 1, 28, 28), jnp.float32)  # NCHW like PyTorch
    w1, b1, w2, b2 = init_params(kp)

    out = net_forward(x, w1, b1, w2, b2)
    out = jax.block_until_ready(out)

    # Reference check in plain JAX f32 (same math as the PyTorch forward).
    # Tolerance loosened because x/w1 and h/w2 enter the MXU as bf16
    # (f32 accumulation keeps the error ~1e-3 at these magnitudes).
    xf = x.reshape(B, -1)
    ref = jax.nn.sigmoid(jnp.maximum(xf @ w1 + b1, 0.0) @ w2 + b2)
    assert out.shape == (B, OUT)
    assert jnp.allclose(out, ref, atol=1e-2, rtol=1e-2), float(
        jnp.max(jnp.abs(out - ref)))

    print("KERNEL_OK")
</pallas_src>

<mosaic_0001>
module attributes {stable_mosaic.version = 11 : i64} {
  func.func @mlp_kernel(%arg0: i32, %arg1: memref<8x784xf32, #tpu.memory_space<vmem>>, %arg2: memref<784x128xbf16, #tpu.memory_space<vmem>>, %arg3: memref<1x128xf32, #tpu.memory_space<vmem>>, %arg4: memref<128x16xbf16, #tpu.memory_space<vmem>>, %arg5: memref<1x16xf32, #tpu.memory_space<vmem>>, %arg6: memref<8x16xf32, #tpu.memory_space<vmem>>) attributes {dimension_semantics = [#tpu.dimension_semantics<parallel>], iteration_bounds = array<i64: 1>, scalar_prefetch = 0 : i64, scratch_operands = 0 : i64, tpu.core_type = #tpu.core_type<tc>, window_params = [{transform_indices = @transform_0, window_bounds = array<i64: 8, 784>}, {pipeline_mode = #tpu.pipeline_mode<synchronous>, transform_indices = @transform_1, window_bounds = array<i64: 784, 128>}, {pipeline_mode = #tpu.pipeline_mode<synchronous>, transform_indices = @transform_2, window_bounds = array<i64: 1, 128>}, {pipeline_mode = #tpu.pipeline_mode<synchronous>, transform_indices = @transform_3, window_bounds = array<i64: 128, 16>}, {pipeline_mode = #tpu.pipeline_mode<synchronous>, transform_indices = @transform_4, window_bounds = array<i64: 1, 16>}, {transform_indices = @transform_5, window_bounds = array<i64: 8, 16>}]} {
    %c0 = arith.constant 0 : index
    %c0_0 = arith.constant 0 : index
    %0 = vector.load %arg1[%c0, %c0_0] : memref<8x784xf32, #tpu.memory_space<vmem>>, vector<8x784xf32>
    %1 = arith.truncf %0 : vector<8x784xf32> to vector<8x784xbf16>
    %c0_1 = arith.constant 0 : index
    %c0_2 = arith.constant 0 : index
    %2 = vector.load %arg2[%c0_1, %c0_2] : memref<784x128xbf16, #tpu.memory_space<vmem>>, vector<784x128xbf16>
    %cst = arith.constant dense<0.000000e+00> : vector<8x128xf32>
    %3 = tpu.matmul %1, %2, %cst {dimension_numbers = #tpu.dot_dimension_numbers<[1], [0], [0], [1], [0, 0, 1, 1], [], []>} : vector<8x784xbf16>, vector<784x128xbf16>, vector<8x128xf32> -> vector<8x128xf32>
    %c0_3 = arith.constant 0 : index
    %c0_4 = arith.constant 0 : index
    %4 = vector.load %arg3[%c0_3, %c0_4] : memref<1x128xf32, #tpu.memory_space<vmem>>, vector<1x128xf32>
    %5 = vector.broadcast %4 : vector<1x128xf32> to vector<8x128xf32>
    %6 = arith.addf %3, %5 : vector<8x128xf32>
    %cst_5 = arith.constant 0.000000e+00 : f32
    %7 = vector.broadcast %cst_5 : f32 to vector<8x128xf32>
    %8 = arith.maximumf %6, %7 : vector<8x128xf32>
    %9 = arith.truncf %8 : vector<8x128xf32> to vector<8x128xbf16>
    %c0_6 = arith.constant 0 : index
    %c0_7 = arith.constant 0 : index
    %10 = vector.load %arg4[%c0_6, %c0_7] : memref<128x16xbf16, #tpu.memory_space<vmem>>, vector<128x16xbf16>
    %cst_8 = arith.constant dense<0.000000e+00> : vector<8x16xf32>
    %11 = tpu.matmul %9, %10, %cst_8 {dimension_numbers = #tpu.dot_dimension_numbers<[1], [0], [0], [1], [0, 0, 1, 1], [], []>} : vector<8x128xbf16>, vector<128x16xbf16>, vector<8x16xf32> -> vector<8x16xf32>
    %c0_9 = arith.constant 0 : index
    %c0_10 = arith.constant 0 : index
    %12 = vector.load %arg5[%c0_9, %c0_10] : memref<1x16xf32, #tpu.memory_space<vmem>>, vector<1x16xf32>
    %13 = vector.broadcast %12 : vector<1x16xf32> to vector<8x16xf32>
    %14 = arith.addf %11, %13 : vector<8x16xf32>
    %15 = arith.negf %14 : vector<8x16xf32>
    %16 = math.exp %15 : vector<8x16xf32>
    %cst_11 = arith.constant 1.000000e+00 : f32
    %17 = vector.broadcast %cst_11 : f32 to vector<8x16xf32>
    %18 = arith.addf %17, %16 : vector<8x16xf32>
    %19 = arith.divf %17, %18 : vector<8x16xf32>
    %c0_12 = arith.constant 0 : index
    %c0_13 = arith.constant 0 : index
    %20 = vector.load %arg6[%c0_12, %c0_13] : memref<8x16xf32, #tpu.memory_space<vmem>>, vector<8x16xf32>
    tpu.vector_store %arg6[%c0_12, %c0_13], %19 {strides = array<i32>} : memref<8x16xf32, #tpu.memory_space<vmem>>, vector<8x16xf32>,
    return
  }
  func.func @transform_0(%arg0: i32) -> (i32, i32) {
    %c0_i32 = arith.constant 0 : i32
    %c0_i32_0 = arith.constant 0 : i32
    return %arg0, %c0_i32 : i32, i32
  }
  func.func @transform_1(%arg0: i32) -> (i32, i32) {
    %c0_i32 = arith.constant 0 : i32
    %c0_i32_0 = arith.constant 0 : i32
    %c0_i32_1 = arith.constant 0 : i32
    return %c0_i32, %c0_i32_0 : i32, i32
  }
  func.func @transform_2(%arg0: i32) -> (i32, i32) {
    %c0_i32 = arith.constant 0 : i32
    %c0_i32_0 = arith.constant 0 : i32
    %c0_i32_1 = arith.constant 0 : i32
    return %c0_i32, %c0_i32_0 : i32, i32
  }
  func.func @transform_3(%arg0: i32) -> (i32, i32) {
    %c0_i32 = arith.constant 0 : i32
    %c0_i32_0 = arith.constant 0 : i32
    %c0_i32_1 = arith.constant 0 : i32
    return %c0_i32, %c0_i32_0 : i32, i32
  }
  func.func @transform_4(%arg0: i32) -> (i32, i32) {
    %c0_i32 = arith.constant 0 : i32
    %c0_i32_0 = arith.constant 0 : i32
    %c0_i32_1 = arith.constant 0 : i32
    return %c0_i32, %c0_i32_0 : i32, i32
  }
  func.func @transform_5(%arg0: i32) -> (i32, i32) {
    %c0_i32 = arith.constant 0 : i32
    %c0_i32_0 = arith.constant 0 : i32
    return %arg0, %c0_i32 : i32, i32
  }
}

</mosaic_0001>

<bundles_post_ra>
// kernel: tpu_custom_call.1
= control target key start
LH: loop header
LB: loop body
LE: loop exit
PB: predicated region body
PF: predicated region fallthrough
CT: control target
= control target key end

     0   :  { %10 = vsyncpa [#allocation3], 0  ;;  %s1153_s0 = inlined_call_operand.vmem [shape: f32[8,784], index: 0, kind: input, shape index: {}]   ;;  %s1154_s1 = inlined_call_operand.hbm [shape: bf16[784,128], index: 1, kind: input, shape index: {}]   ;;  %s1155_s2 = inlined_call_operand.vmem [shape: f32[1,128], index: 2, kind: input, shape index: {}]   ;;  %s1156_s3 = inlined_call_operand.vmem [shape: bf16[128,16], index: 3, kind: input, shape index: {}]   ;;  %s1157_s4 = inlined_call_operand.vmem [shape: f32[1,16], index: 4, kind: input, shape index: {}]   ;;  %s1158_s5 = inlined_call_operand.hbm [shape: f32[8,16], index: 5, kind: output, shape index: {}]  }
   0x1   :  { %11 = vsyncpa [#allocation4], 0  ;;  %s1027_s18 = smov [#allocation2]   ;;  %s979_s22 = scalar_lea.hbm %s1154_s1, 6272 }
   0x2   :  { %s19_s19 = sshll.u32 %s1027_s18, 4  ;;  %p980_p0 = scmp.ne.s32.totalorder %s1154_s1, %s979_s22  ;;  %s20_s19 = int_to_ptr.vmem [resolvable:$true] %s19_s19 }
   0x3   :  { %p983_p1 = scmp.lt.u32.totalorder %s979_s22, %s1154_s1 }
   0x5   :  { %p985_p2 = pnand %p983_p1, %p980_p0 }
   0x7   :  { %988 = shalt.err (!%p985_p2)
}
   0x8   :  { %s989_s27 = scalar_lea.vmem %s20_s19, 6272  ;;  %p994_p4 = scmp.lt.s32.totalorder %s20_s19, %s20_s19 }
   0x9   :  { %p990_p3 = scmp.ne.s32.totalorder %s20_s19, %s989_s27  ;;  %p995_p5 = scmp.lt.s32.totalorder %s989_s27, %s989_s27 }
   0xb   :  { %p996_p6 = por %p995_p5, %p994_p4 }
   0xd   :  { %p997_p7 = pnand %p996_p6, %p990_p3 }
   0xf   :  { %1000 = shalt.err (!%p997_p7)
}
  0x10   :  { %s1028_s28 = smov 64   ;;  %s1029_s29 = smov 4  }
  0x11   :  { %25 = dma.hbm_to_vmem [thread:$0]  %s1154_s1, 6272, %s20_s19, [#allocation3], %s1028_s28, %s1028_s28, %s1029_s29  }
  0x12   :  { %1023 = dma.done.wait [#allocation3], 6272  }
  0x13   :  { %1024 = vsyncadd [#allocation3], 4294961024  ;;  %v918_v0 = vld [vmem:[#allocation2 + $0x40] sm:$0xff]   ;;  %v922_v4 = vld [vmem:[#allocation2 + $0x48] sm:$0xff]   ;;  %v1030_v44 = vmov 0.0   ;;  %vm1031_vm0 = vmmov 0  }
  0x14   :  { %v919_v1 = vld [vmem:[#allocation2] sm:$0xff]   ;;  %809 = vmatprep.subr.bf16.mxu0 %v918_v0  ;;  %v923_v5 = vld [vmem:[#allocation2 + $0x8] sm:$0xff]   ;;  %v926_v8 = vld [vmem:[#allocation2 + $0x50] sm:$0xff]   ;;  %vm449_vm1 = vcmask 130048   ;;  %s1032_s11 = smov [#allocation5]  }
  0x15   :  { %v920_v2 = vld [vmem:[#allocation2 + $0xc0] sm:$0xff]   ;;  %810 = vmatpush3.bf16.msra.mxu0 %v919_v1  ;;  %v924_v6 = vld [vmem:[#allocation2 + $0xc8] sm:$0xff]   ;;  %v927_v9 = vld [vmem:[#allocation2 + $0x10] sm:$0xff]   ;;  %s739_s12 = sshll.u32 %s1032_s11, 4  ;;  %s740_s12 = int_to_ptr.vmem [resolvable:$true] %s739_s12 }
  0x16   :  { %v921_v3 = vld [vmem:[#allocation2 + $0x80] sm:$0xff]   ;;  %831 = vmatprep.subr.bf16.mxu1 %v920_v2  ;;  %811 = vmatprep.subr.bf16.mxu0 %v922_v4  ;;  %v925_v7 = vld [vmem:[#allocation2 + $0x88] sm:$0xff]   ;;  %v928_v10 = vld [vmem:[#allocation2 + $0xd0] sm:$0xff]   ;;  %s1001_s13 = scalar_lea.vmem %s740_s12, 128  ;;  %p1006_p9 = scmp.lt.s32.totalorder %s740_s12, %s740_s12 }
  0x17   :  { %832 = vmatpush3.bf16.msra.mxu1 %v921_v3  ;;  %v929_v11 = vld [vmem:[#allocation2 + $0x90] sm:$0xff]   ;;  %v930_v12 = vld [vmem:[#allocation2 + $0x58] sm:$0xff]   ;;  %v934_v16 = vld [vmem:[#allocation2 + $0x60] sm:$0xff]   ;;  %p1002_p8 = scmp.ne.s32.totalorder %s740_s12, %s1001_s13  ;;  %p1007_p10 = scmp.lt.s32.totalorder %s1001_s13, %s1001_s13 }
  0x18   :  { %833 = vmatprep.subr.bf16.mxu1 %v924_v6  ;;  %v931_v13 = vld [vmem:[#allocation2 + $0x18] sm:$0xff]   ;;  %v935_v17 = vld [vmem:[#allocation2 + $0x20] sm:$0xff]   ;;  %v938_v20 = vld [vmem:[#allocation2 + $0x68] sm:$0xff]  }
  0x19   :  { %812 = vmatpush3.bf16.msra.mxu0 %v923_v5  ;;  %v932_v14 = vld [vmem:[#allocation2 + $0xd8] sm:$0xff]   ;;  %v936_v18 = vld [vmem:[#allocation2 + $0xe0] sm:$0xff]   ;;  %v939_v21 = vld [vmem:[#allocation2 + $0x28] sm:$0xff]   ;;  %p1008_p11 = por %p1007_p10, %p1006_p9 }
  0x1a   :  { %813 = vmatprep.subr.bf16.mxu0 %v926_v8  ;;  %v933_v15 = vld [vmem:[#allocation2 + $0x98] sm:$0xff]   ;;  %v937_v19 = vld [vmem:[#allocation2 + $0xa0] sm:$0xff]   ;;  %v940_v22 = vld [vmem:[#allocation2 + $0xe8] sm:$0xff]  }
  0x1b   :  { %834 = vmatpush3.bf16.msra.mxu1 %v925_v7  ;;  %v941_v23 = vld [vmem:[#allocation2 + $0xa8] sm:$0xff]   ;;  %v942_v24 = vld [vmem:[#allocation2 + $0x70] sm:$0xff]   ;;  %v946_v28 = vld [vmem:[#allocation2 + $0x78] sm:$0xff]   ;;  %p1009_p12 = pnand %p1008_p11, %p1002_p8 }
  0x1c   :  { %835 = vmatprep.subr.bf16.mxu1 %v928_v10  ;;  %v943_v25 = vld [vmem:[#allocation2 + $0x30] sm:$0xff]   ;;  %v947_v29 = vld [vmem:[#allocation2 + $0x38] sm:$0xff]   ;;  %v37_v31 = vld [vmem:[%s1153_s0 + $0x8] sm:$0xff] }
  0x1d   :  { %814 = vmatpush3.bf16.msra.mxu0 %v927_v9  ;;  %v944_v26 = vld [vmem:[#allocation2 + $0xf0] sm:$0xff]   ;;  %v948_v30 = vld [vmem:[#allocation2 + $0xf8] sm:$0xff]   ;;  %v44_v32 = vpack.c.bf16 %v37_v31, %v37_v31  ;;  %v36_v34 = vld [vmem:[%s1153_s0] sm:$0xff] }
  0x1e   :  { %815 = vmatprep.subr.bf16.mxu0 %v930_v12  ;;  %v945_v27 = vld [vmem:[#allocation2 + $0xb0] sm:$0xff]   ;;  %v949_v33 = vld [vmem:[#allocation2 + $0xb8] sm:$0xff]   ;;  %v43_v35 = vpack.c.bf16 %v36_v34, %v36_v34  ;;  %v950_v36 = vld [vmem:[#allocation2 + $0x140] sm:$0xff]  }
  0x1f   :  { %836 = vmatpush3.bf16.msra.mxu1 %v929_v11  ;;  %v39_v37 = vld [vmem:[%s1153_s0 + $0x18] sm:$0xff]  ;;  %485 = vmatprep.mubr.bf16.mxu0 %v44_v32  ;;  %v951_v39 = vld [vmem:[#allocation2 + $0x100] sm:$0xff]   ;;  %v38_v40 = vld [vmem:[%s1153_s0 + $0x10] sm:$0xff] }
  0x20   :  { %837 = vmatprep.subr.bf16.mxu1 %v932_v14  ;;  %v46_v38 = vpack.c.bf16 %v39_v37, %v39_v37  ;;  %v45_v41 = vpack.c.bf16 %v38_v40, %v38_v40  ;;  %v952_v42 = vld [vmem:[#allocation2 + $0x148] sm:$0xff]   ;;  %v954_v45 = vld [vmem:[#allocation2 + $0x150] sm:$0xff]   ;;  %v956_v47 = vld [vmem:[#allocation2 + $0x158] sm:$0xff]  }
  0x21   :  { %816 = vmatpush3.bf16.msra.mxu0 %v931_v13  ;;  %v953_v43 = vld [vmem:[#allocation2 + $0x108] sm:$0xff]   ;;  %v955_v46 = vld [vmem:[#allocation2 + $0x110] sm:$0xff]   ;;  %v957_v48 = vld [vmem:[#allocation2 + $0x118] sm:$0xff]  }
  0x22   :  { %817 = vmatprep.subr.bf16.mxu0 %v934_v16  ;;  %525 = vmatprep.mubr.bf16.mxu1 %v46_v38  ;;  %v958_v49 = vld [vmem:[#allocation2 + $0x160] sm:$0xff]   ;;  %v960_v51 = vld [vmem:[#allocation2 + $0x168] sm:$0xff]   ;;  %v962_v55 = vld [vmem:[#allocation2 + $0x170] sm:$0xff]  }
  0x23   :  { %838 = vmatpush3.bf16.msra.mxu1 %v933_v15  ;;  %v959_v50 = vld [vmem:[#allocation2 + $0x120] sm:$0xff]   ;;  %v961_v52 = vld [vmem:[#allocation2 + $0x128] sm:$0xff]   ;;  %v42_v57 = vld [vmem:[%s1153_s0 + $0x30] sm:$0xff] }
  0x24   :  { %839 = vmatprep.subr.bf16.mxu1 %v936_v18  ;;  %v966_v53 = vld [vmem:[#allocation2 + $0x180] sm:$0xff]   ;;  %v41_v54 = vld [vmem:[%s1153_s0 + $0x28] sm:$0xff]  ;;  %v49_v58 = vpack.c.bf16 %v42_v57, %v42_v57  ;;  %v963_v59 = vld [vmem:[#allocation2 + $0x130] sm:$0xff]  }
  0x25   :  { %818 = vmatpush3.bf16.msra.mxu0 %v935_v17  ;;  %v48_v56 = vpack.c.bf16 %v41_v54, %v41_v54  ;;  %v964_v60 = vld [vmem:[#allocation2 + $0x178] sm:$0xff]   ;;  %v40_v62 = vld [vmem:[%s1153_s0 + $0x20] sm:$0xff]  ;;  %v968_v1 = vld [vmem:[%s1156_s3 + $0x8] sm:$0xff]  }
  0x26   :  { %819 = vmatprep.subr.bf16.mxu0 %v938_v20  ;;  %v965_v61 = vld [vmem:[#allocation2 + $0x138] sm:$0xff]   ;;  %v47_v63 = vpack.c.bf16 %v40_v62, %v40_v62  ;;  %v967_v0 = vld [vmem:[%s1156_s3] sm:$0xff]   ;;  %v969_v2 = vld [vmem:[%s1156_s3 + $0x10] sm:$0xff]  }
  0x27   :  { %840 = vmatpush3.bf16.msra.mxu1 %v937_v19  ;;  %v970_v3 = vld [vmem:[%s1156_s3 + $0x18] sm:$0xff]   ;;  %v971_v4 = vld [vmem:[%s1156_s3 + $0x20] sm:$0xff]   ;;  %v972_v5 = vld [vmem:[%s1156_s3 + $0x28] sm:$0xff]  }
  0x28   :  { %841 = vmatprep.subr.bf16.mxu1 %v940_v22  ;;  %v973_v6 = vld [vmem:[%s1156_s3 + $0x30] sm:$0xff]   ;;  %v974_v7 = vld [vmem:[%s1156_s3 + $0x38] sm:$0xff]   ;;  %v748_v9 = vld [vmem:[%s1155_s2] ss:$0 sm:$0xff] }
  0x29   :  { %820 = vmatpush3.bf16.msra.mxu0 %v939_v21  ;;  %v799_v34 = vld [vmem:[%s1157_s4] ss:$0 sm:$0xff] }
  0x2a   :  { %821 = vmatprep.subr.bf16.mxu0 %v942_v24 }
  0x2b   :  { %842 = vmatpush3.bf16.msra.mxu1 %v941_v23 }
  0x2c   :  { %843 = vmatprep.subr.bf16.mxu1 %v944_v26 }
  0x2d   :  { %822 = vmatpush3.bf16.msra.mxu0 %v943_v25 }
  0x2e   :  { %823 = vmatprep.subr.bf16.mxu0 %v946_v28 }
  0x2f   :  { %844 = vmatpush3.bf16.msra.mxu1 %v945_v27 }
  0x30   :  { %845 = vmatprep.subr.bf16.mxu1 %v948_v30 }
  0x31   :  { %824 = vmatpush3.bf16.msra.mxu0 %v947_v29 }
  0x32   :  { %853 = vmatprep.subr.bf16.mxu0 %v950_v36 }
  0x33   :  { %846 = vmatpush3.bf16.msra.mxu1 %v949_v33 }
  0x34   :  { %486 = vmatmul.mubr.bf16.vlgmr.msra.gmra.mrb[0].mxu0 %v43_v35  ;;  %886 = vmatprep.subr.bf16.mxu1 %v1030_v44 }
  0x35   :  { %854 = vmatpush3.bf16.msra.mxu0 %v951_v39  ;;  %565 = vmatprep.mubr.bf16.mxu0 %v48_v56 }
  0x36   :  { %526 = vmatmul.mubr.bf16.vlgmr.msra.gmra.mrb[0].mxu1 %v45_v41  ;;  %855 = vmatprep.subr.bf16.mxu0 %v952_v42 }
  0x37   :  { %888 = vmatprep.mubr.msk.bf16.mxu1 %vm1031_vm0, %v1030_v44  ;;  %887 = vmatpush3.bf16.msra.mxu1 %v966_v53 }
  0x38   :  { %892 = vmatprep.subr.bf16.mxu1 %v1030_v44 }
  0x39   :  { %856 = vmatpush3.bf16.msra.mxu0 %v953_v43 }
  0x3a   :  { %857 = vmatprep.subr.bf16.mxu0 %v954_v45 }
  0x3d   :  { %858 = vmatpush3.bf16.msra.mxu0 %v955_v46 }
  0x3e   :  { %859 = vmatprep.subr.bf16.mxu0 %v956_v47  ;;  %889 = vmatmul.mubr.msk.bf16.vlgmr.msra.gmra.mrb[4].mxu1 %vm449_vm1, %v49_v58 }
  0x3f   :  { %908 = vmatprep.mubr.msk.bf16.mxu1 %vm1031_vm0, %v1030_v44  ;;  %893 = vmatpush3.bf16.msra.mxu1 %v967_v0 }
  0x40   :  { %894 = vmatprep.subr.bf16.mxu1 %v1030_v44 }
  0x41   :  { %860 = vmatpush3.bf16.msra.mxu0 %v957_v48 }
  0x42   :  { %861 = vmatprep.subr.bf16.mxu0 %v958_v49 }
  0x43   :  { %895 = vmatpush3.bf16.msra.mxu1 %v968_v1 }
  0x44   :  { %896 = vmatprep.subr.bf16.mxu1 %v1030_v44 }
  0x45   :  { %862 = vmatpush3.bf16.msra.mxu0 %v959_v50 }
  0x46   :  { %863 = vmatprep.subr.bf16.mxu0 %v960_v51 }
  0x47   :  { %897 = vmatpush3.bf16.msra.mxu1 %v969_v2 }
  0x48   :  { %898 = vmatprep.subr.bf16.mxu1 %v1030_v44 }
  0x49   :  { %864 = vmatpush3.bf16.msra.mxu0 %v961_v52 }
  0x4a   :  { %865 = vmatprep.subr.bf16.mxu0 %v962_v55 }
  0x4b   :  { %899 = vmatpush3.bf16.msra.mxu1 %v970_v3 }
  0x4c   :  { %900 = vmatprep.subr.bf16.mxu1 %v1030_v44 }
  0x4d   :  { %866 = vmatpush3.bf16.msra.mxu0 %v963_v59 }
  0x4e   :  { %867 = vmatprep.subr.bf16.mxu0 %v964_v60 }
  0x4f   :  { %901 = vmatpush3.bf16.msra.mxu1 %v971_v4 }
  0x50   :  { %902 = vmatprep.subr.bf16.mxu1 %v1030_v44 }
  0x51   :  { %868 = vmatpush3.bf16.msra.mxu0 %v965_v61 }
  0x53   :  { %903 = vmatpush3.bf16.msra.mxu1 %v972_v5 }
  0x54   :  { %566 = vmatmul.mubr.bf16.vlgmr.msra.gmra.mrb[4].mxu0 %v47_v63  ;;  %904 = vmatprep.subr.bf16.mxu1 %v1030_v44 }
  0x57   :  { %905 = vmatpush3.bf16.msra.mxu1 %v973_v6 }
  0x58   :  { %906 = vmatprep.subr.bf16.mxu1 %v1030_v44 }
  0x5b   :  { %907 = vmatpush3.bf16.msra.mxu1 %v974_v7 }
 0x107   :  { %v825_v8 = vpop.f32.mrb[0].mxu0 }
 0x108   :  { %v826_v10 = vpop.f32.mrb[1].mxu0 }
 0x109   :  { %v827_v11 = vadd.f32 %v826_v10, %v825_v8  ;;  %v828_v12 = vpop.f32.mrb[2].mxu0  ;;  %v847_v13 = vpop.f32.mrb[0].mxu1 }
 0x10a   :  { %v829_v14 = vpop.f32.mrb[3].mxu0  ;;  %v848_v16 = vpop.f32.mrb[1].mxu1 }
 0x10b   :  { %v488_v15 = vadd.f32 %v827_v11, %v748_v9  ;;  %v849_v17 = vadd.f32 %v848_v16, %v847_v13  ;;  %v850_v18 = vpop.f32.mrb[2].mxu1 }
 0x10c   :  { %v851_v19 = vpop.f32.mrb[3].mxu1 }
 0x10d   :  { %v528_v20 = vadd.f32 %v849_v17, %v488_v15 }
 0x111   :  { %v607_v21 = vpop.f32.mrb[4].mxu1 }
 0x112   :  { %v890_v22 = vpop.f32.mrb[5].mxu1 }
 0x113   :  { %v610_v23 = vpop.f32.mrb[6].mxu1 }
 0x114   :  { %v891_v24 = vpop.f32.mrb[7].mxu1 }
 0x127   :  { %v869_v25 = vpop.f32.mrb[4].mxu0 }
 0x128   :  { %v870_v26 = vpop.f32.mrb[5].mxu0 }
 0x129   :  { %v871_v27 = vadd.f32 %v870_v26, %v869_v25  ;;  %v872_v28 = vpop.f32.mrb[6].mxu0 }
 0x12a   :  { %v873_v29 = vpop.f32.mrb[7].mxu0 }
 0x12b   :  { %v568_v30 = vadd.f32 %v871_v27, %v528_v20 }
 0x12d   :  { %v608_v31 = vadd.f32 %v607_v21, %v568_v30 }
 0x12f   :  { %v613_v32 = vmax.f32 %v608_v31, 0.0 }
 0x131   :  { %v614_v33 = vpack.c.bf16 %v613_v32, %v613_v32 }
 0x133   :  { %909 = vmatmul.mubr.bf16.vlgmr.msra.gmra.mrb[8].mxu1 %v614_v33 }
 0x206   :  { %v720_v35 = vpop.f32.mrb[8].mxu1 }
 0x207   :  { %v721_v36 = vadd.f32 %v799_v34, %v720_v35  ;;  %v910_v37 = vpop.f32.mrb[9].mxu1 }
 0x208   :  { %v723_v38 = vpop.f32.mrb[10].mxu1 }
 0x209   :  { %v808_v39 = vmul.f32 -1.442695, %v721_v36  ;;  %v911_v40 = vpop.f32.mrb[11].mxu1 }
 0x20b   :  { %975 = vpow2.f32 %v808_v39 }
 0x215   :  { %v976_v41 = vpop.eup %975 }
 0x216   :  { %v729_v42 = vadd.f32 1.0, %v976_v41 }
 0x218   :  { %977 = vrcp.f32 %v729_v42 }
 0x222   :  { %v978_v43 = vpop.eup %977 }
 0x223   :  { %732 = vst.msk [vmem:[#allocation5] sm:$0xff] %vm449_vm1, %v978_v43 }
 0x224   :  { %1012 = shalt.err (!%p1009_p12)
}
 0x225   :  { %s1013_s15 = scalar_lea.hbm %s1158_s5, 128 }
 0x226   :  { %p1014_p13 = scmp.ne.s32.totalorder %s1158_s5, %s1013_s15  ;;  %p1017_p0 = scmp.lt.u32.totalorder %s1013_s15, %s1158_s5 }
 0x228   :  { %p1019_p1 = pnand %p1017_p0, %p1014_p13 }
 0x22a   :  { %1022 = shalt.err (!%p1019_p1)
}
 0x22b   :  { %742 = dma.vmem_to_hbm [thread:$0]  %s740_s12, 128, %s1158_s5, [#allocation4]  }
 0x22c   :  { %1025 = dma.done.wait [#allocation4], 128  }
 0x22d   :  { %1026 = vsyncadd [#allocation4], 4294967168 }
 0x22e   :  { %746 = vsyncpa [#allocation3], 1 }
 0x22f   :  { %747 = vsyncpa [#allocation4], 1 }

</bundles_post_ra>
